<compile_context>
chip_gen: v7x
topology: tpu7x:2x2x1
jax: 0.10.0
libtpu: 0.0.40
codegen_flags: <defaults>
</compile_context>

<pallas_src>
import jax
import jax.numpy as jnp
from jax.experimental import pallas as pl
from jax.experimental.pallas import tpu as pltpu


def _fused_mlp_kernel(emb_ref, nxt_ref, w1_ref, b1_ref, w2_ref, b2_ref, o_ref):
    # emb_ref: [1, TM, E]  bf16  embedding rows [i*TM, i*TM + TM) of batch b
    # nxt_ref: [1, 8,  E]  bf16  embedding rows [i*TM + TM, i*TM + TM + 8)
    # w1_ref : [W*E, Hp]   bf16  Linear1 weight (hidden dim zero padded)
    # b1_ref : [1, Hp]     f32   Linear1 bias   (zero padded)
    # w2_ref : [1, Hp]     f32   Linear2 weight as a row (zero padded)
    # b2_ref : [1, 1]      f32   Linear2 bias (SMEM scalar)
    # o_ref  : [1, TM//128, 128] f32 lane-dense probabilities
    cur = emb_ref[0]                                     # [TM, E]
    ext = jnp.concatenate([cur, nxt_ref[0]], axis=0)     # [TM+8, E]
    tm, e = cur.shape
    n_w = w1_ref.shape[0] // e
    hp = w1_ref.shape[1]

    # x @ W1 decomposed into W shifted matmuls on the un-duplicated embedding
    # stream (MXU, bf16 operands, f32 accumulation).
    acc = jnp.dot(ext[0:tm], w1_ref[0:e, :], preferred_element_type=jnp.float32)
    for w in range(1, n_w):
        acc = acc + jnp.dot(ext[w:w + tm], w1_ref[w * e:(w + 1) * e, :],
                            preferred_element_type=jnp.float32)
    h = jnp.tanh(acc + b1_ref[...])                      # [TM, Hp] f32 (EUP)

    # Second Linear (single output column) on VPU + XLU; lane-dense output.
    rows = tm // 128
    h3 = h.reshape(rows, 128, hp)                        # lane-preserving split
    logits = jnp.sum(h3 * w2_ref[...].reshape(1, 1, hp), axis=-1)   # [rows, 128]
    o_ref[0] = jax.nn.sigmoid(logits + b2_ref[0, 0])


def word_window_classifier_forward(inputs, embed_table, w1, b1, w2, b2,
                                   window_size, *, tm_max=2048):
    """inputs: [B, L] int32 token ids. Returns [B, L~] float32 probabilities."""
    B, L = inputs.shape
    W = 2 * window_size + 1
    Lt = L - W + 1
    assert Lt >= 1, "sequence shorter than the word window"
    E = embed_table.shape[1]
    H = w1.shape[1]
    LANE = 128
    H_pad = ((H + LANE - 1) // LANE) * LANE

    # Row tile along L~: multiple of 128, capped at tm_max; with B == 1 aim for
    # >= 2 grid steps so both v7x TensorCores get work (v5e/v6e: 1 TC, no-op).
    target = Lt if B > 1 else -(-Lt // 2)
    tm = min(tm_max, max(LANE, ((target + LANE - 1) // LANE) * LANE))
    n_t = -(-Lt // tm)
    rows = tm // LANE

    # Glue: bf16 gather of the UN-duplicated embedding sequence (cast before
    # the gather, no f32 intermediate, no window unfold).  Pad the sequence so
    # every (current, spill) block is in bounds; padded rows feed only output
    # rows >= Lt which are sliced off below.
    emb = embed_table.astype(jnp.bfloat16)[inputs]                 # [B, L, E]
    L_emb = n_t * tm + 8
    emb = jnp.pad(emb, ((0, 0), (0, L_emb - L), (0, 0)))

    w1p = jnp.pad(w1, ((0, 0), (0, H_pad - H))).astype(jnp.bfloat16)      # [W*E, Hp]
    b1p = jnp.pad(b1.reshape(1, H), ((0, 0), (0, H_pad - H))).astype(jnp.float32)
    w2p = jnp.pad(w2.reshape(1, H), ((0, 0), (0, H_pad - H))).astype(jnp.float32)
    b2s = b2.reshape(1, 1).astype(jnp.float32)

    Mp = B * n_t * tm
    cost = pl.CostEstimate(
        flops=2 * Mp * (W * E) * H_pad + 2 * Mp * H_pad,
        transcendentals=Mp * (H_pad + 1),
        bytes_accessed=(Mp * E * 2 + B * n_t * 8 * E * 2
                        + W * E * H_pad * 2 + 2 * H_pad * 4 + 4 + Mp * 4),
    )

    out = pl.pallas_call(
        _fused_mlp_kernel,
        out_shape=jax.ShapeDtypeStruct((B * n_t, rows, LANE), jnp.float32),
        grid=(B, n_t),
        in_specs=[
            # current TM embedding rows of batch b
            pl.BlockSpec((1, tm, E), lambda b, i: (b, i, 0)),
            # 8 spill rows just past the tile (block index in units of 8 rows)
            pl.BlockSpec((1, 8, E), lambda b, i: (b, (i + 1) * (tm // 8), 0)),
            pl.BlockSpec((W * E, H_pad), lambda b, i: (0, 0)),   # W1 (resident)
            pl.BlockSpec((1, H_pad), lambda b, i: (0, 0)),       # b1 row
            pl.BlockSpec((1, H_pad), lambda b, i: (0, 0)),       # w2 row
            pl.BlockSpec(memory_space=pltpu.MemorySpace.SMEM),   # b2 scalar
        ],
        out_specs=pl.BlockSpec((1, rows, LANE), lambda b, i: (b * n_t + i, 0, 0)),
        compiler_params=pltpu.CompilerParams(
            dimension_semantics=("parallel", "parallel"),
            # scoped-VMEM limit (not physical VMEM); ample for the ~few-MiB
            # working set at TM=2048 on v5e/v6e/v7x.
            vmem_limit_bytes=32 * 1024 * 1024,
        ),
        cost_estimate=cost,
    )(emb, emb, w1p, b1p, w2p, b2s)

    return out.reshape(B, n_t * tm)[:, :Lt]


def _reference_forward(inputs, embed_table, w1, b1, w2, b2, window_size):
    """Pure-JAX f32 reference mirroring the PyTorch module."""
    B, L = inputs.shape
    W = 2 * window_size + 1
    Lt = L - W + 1
    win_idx = jnp.arange(Lt)[:, None] + jnp.arange(W)[None, :]
    tw = inputs[:, win_idx]
    emb = embed_table[tw].reshape(B, Lt, -1).astype(jnp.float32)
    h = jnp.tanh(emb @ w1 + b1)
    out = jax.nn.sigmoid(h @ w2 + b2)
    return out.reshape(B, Lt)


if __name__ == "__main__":
    # Module hyperparameters (small, consistent with the forward pass).
    window_size = 2
    embed_dim = 16
    hidden_dim = 32
    vocab_size = 50
    pad_idx = 0
    full_window = 2 * window_size + 1   # = 5
    d_in = full_window * embed_dim      # = 80

    key = jax.random.PRNGKey(0)
    k_emb, k_w1, k_b1, k_w2, k_b2, k_in1, k_in2, k_in3 = jax.random.split(key, 8)

    # Deterministic parameter init (synthetic; shapes match nn.Module __init__).
    embed_table = jax.random.normal(k_emb, (vocab_size, embed_dim),
                                    dtype=jnp.float32) * 0.1
    embed_table = embed_table.at[pad_idx].set(0.0)   # padding_idx semantics
    w1 = jax.random.normal(k_w1, (d_in, hidden_dim), dtype=jnp.float32) * 0.1
    b1 = jax.random.normal(k_b1, (hidden_dim,), dtype=jnp.float32) * 0.1
    w2 = jax.random.normal(k_w2, (hidden_dim, 1), dtype=jnp.float32) * 0.1
    b2 = jax.random.normal(k_b2, (1,), dtype=jnp.float32) * 0.1

    # Case 1/2: tiny shapes.  Case 3: B=1, two row tiles — exercises the
    # cross-tile window stitching through the spill-row block.
    cases = [((2, 8), k_in1), ((8, 70), k_in2), ((1, 2200), k_in3)]
    for (B, L), k_in in cases:
        inputs = jax.random.randint(k_in, (B, L), 0, vocab_size, dtype=jnp.int32)
        out = word_window_classifier_forward(inputs, embed_table, w1, b1, w2, b2,
                                             window_size)
        out = jax.block_until_ready(out)
        ref = _reference_forward(inputs, embed_table, w1, b1, w2, b2, window_size)
        Lt = L - full_window + 1
        assert out.shape == (B, Lt)
        # bf16 embeddings / W1 vs the f32 reference -> loose tolerance.
        assert jnp.allclose(out, ref, atol=1e-2, rtol=1e-2), (
            f"max abs err {float(jnp.max(jnp.abs(out - ref)))}")

    print("KERNEL_OK")
</pallas_src>

<mosaic_0001>
module attributes {stable_mosaic.version = 11 : i64} {
  func.func @_fused_mlp_kernel(%arg0: i32, %arg1: i32, %arg2: memref<1x128x16xbf16, #tpu.memory_space<vmem>>, %arg3: memref<1x8x16xbf16, #tpu.memory_space<vmem>>, %arg4: memref<80x128xbf16, #tpu.memory_space<vmem>>, %arg5: memref<1x128xf32, #tpu.memory_space<vmem>>, %arg6: memref<1x128xf32, #tpu.memory_space<vmem>>, %arg7: memref<1x1xf32, #tpu.memory_space<smem>>, %arg8: memref<1x1x128xf32, #tpu.memory_space<vmem>>) attributes {dimension_semantics = [#tpu.dimension_semantics<parallel>, #tpu.dimension_semantics<parallel>], iteration_bounds = array<i64: 2, 1>, scalar_prefetch = 0 : i64, scratch_operands = 0 : i64, tpu.core_type = #tpu.core_type<tc>, window_params = [{transform_indices = @transform_0, window_bounds = array<i64: 1, 128, 16>}, {transform_indices = @transform_1, window_bounds = array<i64: 1, 8, 16>}, {pipeline_mode = #tpu.pipeline_mode<synchronous>, transform_indices = @transform_2, window_bounds = array<i64: 80, 128>}, {pipeline_mode = #tpu.pipeline_mode<synchronous>, transform_indices = @transform_3, window_bounds = array<i64: 1, 128>}, {pipeline_mode = #tpu.pipeline_mode<synchronous>, transform_indices = @transform_4, window_bounds = array<i64: 1, 128>}, {transform_indices = @transform_5, window_bounds = array<i64: 1, 1>}, {transform_indices = @transform_6, window_bounds = array<i64: 1, 1, 128>}]} {
    %c0 = arith.constant 0 : index
    %c0_0 = arith.constant 0 : index
    %c0_1 = arith.constant 0 : index
    %0 = vector.load %arg2[%c0, %c0_0, %c0_1] : memref<1x128x16xbf16, #tpu.memory_space<vmem>>, vector<1x128x16xbf16>
    %1 = vector.shape_cast %0 : vector<1x128x16xbf16> to vector<128x16xbf16>
    %c0_2 = arith.constant 0 : index
    %c0_3 = arith.constant 0 : index
    %c0_4 = arith.constant 0 : index
    %2 = vector.load %arg3[%c0_2, %c0_3, %c0_4] : memref<1x8x16xbf16, #tpu.memory_space<vmem>>, vector<1x8x16xbf16>
    %3 = vector.shape_cast %2 : vector<1x8x16xbf16> to vector<8x16xbf16>
    %4 = tpu.concatenate %1, %3 in 0 : vector<128x16xbf16>, vector<8x16xbf16> -> vector<136x16xbf16>
    %5 = vector.extract_strided_slice %4 {offsets = [0, 0], sizes = [128, 16], strides = [1, 1]} : vector<136x16xbf16> to vector<128x16xbf16>
    %c0_5 = arith.constant 0 : index
    %c0_6 = arith.constant 0 : index
    %6 = vector.load %arg4[%c0_5, %c0_6] : memref<80x128xbf16, #tpu.memory_space<vmem>>, vector<16x128xbf16>
    %cst = arith.constant dense<0.000000e+00> : vector<128x128xf32>
    %7 = tpu.matmul %5, %6, %cst {dimension_numbers = #tpu.dot_dimension_numbers<[1], [0], [0], [1], [0, 0, 1, 1], [], []>} : vector<128x16xbf16>, vector<16x128xbf16>, vector<128x128xf32> -> vector<128x128xf32>
    %8 = vector.extract_strided_slice %4 {offsets = [1, 0], sizes = [128, 16], strides = [1, 1]} : vector<136x16xbf16> to vector<128x16xbf16>
    %c16 = arith.constant 16 : index
    %c0_7 = arith.constant 0 : index
    %9 = vector.load %arg4[%c16, %c0_7] : memref<80x128xbf16, #tpu.memory_space<vmem>>, vector<16x128xbf16>
    %cst_8 = arith.constant dense<0.000000e+00> : vector<128x128xf32>
    %10 = tpu.matmul %8, %9, %cst_8 {dimension_numbers = #tpu.dot_dimension_numbers<[1], [0], [0], [1], [0, 0, 1, 1], [], []>} : vector<128x16xbf16>, vector<16x128xbf16>, vector<128x128xf32> -> vector<128x128xf32>
    %11 = arith.addf %7, %10 : vector<128x128xf32>
    %12 = vector.extract_strided_slice %4 {offsets = [2, 0], sizes = [128, 16], strides = [1, 1]} : vector<136x16xbf16> to vector<128x16xbf16>
    %c32 = arith.constant 32 : index
    %c0_9 = arith.constant 0 : index
    %13 = vector.load %arg4[%c32, %c0_9] : memref<80x128xbf16, #tpu.memory_space<vmem>>, vector<16x128xbf16>
    %cst_10 = arith.constant dense<0.000000e+00> : vector<128x128xf32>
    %14 = tpu.matmul %12, %13, %cst_10 {dimension_numbers = #tpu.dot_dimension_numbers<[1], [0], [0], [1], [0, 0, 1, 1], [], []>} : vector<128x16xbf16>, vector<16x128xbf16>, vector<128x128xf32> -> vector<128x128xf32>
    %15 = arith.addf %11, %14 : vector<128x128xf32>
    %16 = vector.extract_strided_slice %4 {offsets = [3, 0], sizes = [128, 16], strides = [1, 1]} : vector<136x16xbf16> to vector<128x16xbf16>
    %c48 = arith.constant 48 : index
    %c0_11 = arith.constant 0 : index
    %17 = vector.load %arg4[%c48, %c0_11] : memref<80x128xbf16, #tpu.memory_space<vmem>>, vector<16x128xbf16>
    %cst_12 = arith.constant dense<0.000000e+00> : vector<128x128xf32>
    %18 = tpu.matmul %16, %17, %cst_12 {dimension_numbers = #tpu.dot_dimension_numbers<[1], [0], [0], [1], [0, 0, 1, 1], [], []>} : vector<128x16xbf16>, vector<16x128xbf16>, vector<128x128xf32> -> vector<128x128xf32>
    %19 = arith.addf %15, %18 : vector<128x128xf32>
    %20 = vector.extract_strided_slice %4 {offsets = [4, 0], sizes = [128, 16], strides = [1, 1]} : vector<136x16xbf16> to vector<128x16xbf16>
    %c64 = arith.constant 64 : index
    %c0_13 = arith.constant 0 : index
    %21 = vector.load %arg4[%c64, %c0_13] : memref<80x128xbf16, #tpu.memory_space<vmem>>, vector<16x128xbf16>
    %cst_14 = arith.constant dense<0.000000e+00> : vector<128x128xf32>
    %22 = tpu.matmul %20, %21, %cst_14 {dimension_numbers = #tpu.dot_dimension_numbers<[1], [0], [0], [1], [0, 0, 1, 1], [], []>} : vector<128x16xbf16>, vector<16x128xbf16>, vector<128x128xf32> -> vector<128x128xf32>
    %23 = arith.addf %19, %22 : vector<128x128xf32>
    %c0_15 = arith.constant 0 : index
    %c0_16 = arith.constant 0 : index
    %24 = vector.load %arg5[%c0_15, %c0_16] : memref<1x128xf32, #tpu.memory_space<vmem>>, vector<1x128xf32>
    %25 = vector.broadcast %24 : vector<1x128xf32> to vector<128x128xf32>
    %26 = arith.addf %23, %25 : vector<128x128xf32>
    %27 = math.tanh %26 : vector<128x128xf32>
    %28 = vector.shape_cast %27 : vector<128x128xf32> to vector<1x128x128xf32>
    %c0_17 = arith.constant 0 : index
    %c0_18 = arith.constant 0 : index
    %29 = vector.load %arg6[%c0_17, %c0_18] : memref<1x128xf32, #tpu.memory_space<vmem>>, vector<1x128xf32>
    %30 = vector.shape_cast %29 : vector<1x128xf32> to vector<1x1x128xf32>
    %31 = vector.broadcast %30 : vector<1x1x128xf32> to vector<1x128x128xf32>
    %32 = arith.mulf %28, %31 : vector<1x128x128xf32>
    %cst_19 = arith.constant dense<0.000000e+00> : vector<1x128xf32>
    %33 = vector.multi_reduction <add>, %32, %cst_19 [2] : vector<1x128x128xf32> to vector<1x128xf32>
    %c0_20 = arith.constant 0 : index
    %c0_21 = arith.constant 0 : index
    %34 = memref.load %arg7[%c0_20, %c0_21] : memref<1x1xf32, #tpu.memory_space<smem>>
    %35 = vector.broadcast %34 : f32 to vector<1x128xf32>
    %36 = arith.addf %33, %35 : vector<1x128xf32>
    %37 = arith.negf %36 : vector<1x128xf32>
    %38 = math.exp %37 : vector<1x128xf32>
    %cst_22 = arith.constant 1.000000e+00 : f32
    %39 = vector.broadcast %cst_22 : f32 to vector<1x128xf32>
    %40 = arith.addf %39, %38 : vector<1x128xf32>
    %41 = arith.divf %39, %40 : vector<1x128xf32>
    %c0_23 = arith.constant 0 : index
    %c0_24 = arith.constant 0 : index
    %c0_25 = arith.constant 0 : index
    %42 = vector.load %arg8[%c0_23, %c0_24, %c0_25] : memref<1x1x128xf32, #tpu.memory_space<vmem>>, vector<1x1x128xf32>
    %43 = vector.shape_cast %42 : vector<1x1x128xf32> to vector<1x128xf32>
    %44 = vector.shape_cast %41 : vector<1x128xf32> to vector<1x1x128xf32>
    tpu.vector_store %arg8[%c0_23, %c0_24, %c0_25], %44 {strides = array<i32>} : memref<1x1x128xf32, #tpu.memory_space<vmem>>, vector<1x1x128xf32>,
    return
  }
  func.func @transform_0(%arg0: i32, %arg1: i32) -> (i32, i32, i32) {
    %c0_i32 = arith.constant 0 : i32
    %c0_i32_0 = arith.constant 0 : i32
    return %arg0, %arg1, %c0_i32 : i32, i32, i32
  }
  func.func @transform_1(%arg0: i32, %arg1: i32) -> (i32, i32, i32) {
    %c1_i32 = arith.constant 1 : i32
    %0 = arith.addi %arg1, %c1_i32 : i32
    %c16_i32 = arith.constant 16 : i32
    %1 = arith.muli %0, %c16_i32 : i32
    %c0_i32 = arith.constant 0 : i32
    %c0_i32_0 = arith.constant 0 : i32
    return %arg0, %1, %c0_i32 : i32, i32, i32
  }
  func.func @transform_2(%arg0: i32, %arg1: i32) -> (i32, i32) {
    %c0_i32 = arith.constant 0 : i32
    %c0_i32_0 = arith.constant 0 : i32
    %c0_i32_1 = arith.constant 0 : i32
    return %c0_i32, %c0_i32_0 : i32, i32
  }
  func.func @transform_3(%arg0: i32, %arg1: i32) -> (i32, i32) {
    %c0_i32 = arith.constant 0 : i32
    %c0_i32_0 = arith.constant 0 : i32
    %c0_i32_1 = arith.constant 0 : i32
    return %c0_i32, %c0_i32_0 : i32, i32
  }
  func.func @transform_4(%arg0: i32, %arg1: i32) -> (i32, i32) {
    %c0_i32 = arith.constant 0 : i32
    %c0_i32_0 = arith.constant 0 : i32
    %c0_i32_1 = arith.constant 0 : i32
    return %c0_i32, %c0_i32_0 : i32, i32
  }
  func.func @transform_5(%arg0: i32, %arg1: i32) -> (i32, i32) {
    %c0_i32 = arith.constant 0 : i32
    %c0_i32_0 = arith.constant 0 : i32
    %c0_i32_1 = arith.constant 0 : i32
    return %c0_i32, %c0_i32_0 : i32, i32
  }
  func.func @transform_6(%arg0: i32, %arg1: i32) -> (i32, i32, i32) {
    %c1_i32 = arith.constant 1 : i32
    %0 = arith.muli %arg0, %c1_i32 : i32
    %1 = arith.addi %0, %arg1 : i32
    %c0_i32 = arith.constant 0 : i32
    %c0_i32_0 = arith.constant 0 : i32
    %c0_i32_1 = arith.constant 0 : i32
    return %1, %c0_i32, %c0_i32_0 : i32, i32, i32
  }
}

</mosaic_0001>

<bundles_post_ra>
// kernel: tpu_custom_call.1
= control target key start
LH: loop header
LB: loop body
LE: loop exit
PB: predicated region body
PF: predicated region fallthrough
CT: control target
= control target key end

     0   :  { %s2636_s0 = inlined_call_operand.vmem [shape: bf16[2,136,16], index: 0, kind: input, shape index: {}]   ;;  %s2637_s1 = inlined_call_operand.vmem [shape: bf16[2,136,16], index: 1, kind: input, shape index: {}]   ;;  %s2638_s2 = inlined_call_operand.vmem [shape: bf16[80,128], index: 2, kind: input, shape index: {}]   ;;  %s2639_s3 = inlined_call_operand.vmem [shape: f32[1,128], index: 3, kind: input, shape index: {}]   ;;  %s2640_s4 = inlined_call_operand.vmem [shape: f32[1,128], index: 4, kind: input, shape index: {}]   ;;  %s2641_s5 = inlined_call_operand.<no memory space> [shape: f32[1,1], index: 5, kind: input, shape index: {}]   ;;  %s2642_s6 = inlined_call_operand.hbm [shape: f32[2,1,128], index: 6, kind: output, shape index: {}]  }
   0x1   :  { %11 = sst [smem:[#allocation2]] %s2641_s5 }
   0x2   :  { %12 = vsyncpa [#allocation4], 0 }
   0x3   :  { %14 = vsyncpa [#allocation4 + $0x1], 0  ;;  %s2243_s23 = smov 0   ;;  %s2245_s24 = smov 0  }
   0x4   :  { %s2247_s25 = smov 0   ;;  %s2249_s26 = smov 0  }
   0x5   :  { %s2251_s27 = smov 0   ;;  %s2253_s28 = smov 0  }
   0x6 LB: > { %s1673_s5 = sadd.s32 4294967295, %s2202_s28   ;;  %s1674_s29 = sadd.s32 4294967294, %s2202_s28   ;;  %s2202_s28 = sphi %s2253_s28, %s20_s28   ;;  %s2198_s27 = sphi %s2251_s27, %s2649_s27   ;;  %s2194_s26 = sphi %s2249_s26, %s2648_s26   ;;  %s2190_s25 = sphi %s2247_s25, %s2647_s25   ;;  %s2186_s24 = sphi %s2245_s24, %s2646_s24   ;;  %s2182_s23 = sphi %s2243_s23, %s2645_s23  }
   0x7   : > { %s32_s30 = sadd.s32 1, %s2198_s27  ;;  %s185_s7 = sadd.s32 1, %s2190_s25 }
   0x8   : > { %p34_p0 = scmp.ge.s32.totalorder %s32_s30, 2  ;;  %p195_p1 = scmp.ne.s32.totalorder %s2190_s25, %s2186_s24 }
   0x9   : > { %p196_p2 = scmp.eq.s32.totalorder %s1673_s5, 1  ;;  %p201_p3 = scmp.ne.s32.totalorder %s2186_s24, %s2182_s23 }
   0xa   : > { %s2651_s30 = smov (%p34_p0, %s32_s30), 0  ;;  %p202_p5 = scmp.eq.s32.totalorder %s1674_s29, 1 }
   0xb   : > { %p2283_p4 = por %p196_p2, %p195_p1  ;;  %s182_s9 = ssub.s32 %s2198_s27, %s2651_s30 }
   0xc   : > { %p1677_p6 = scmp.ge.s32.totalorder %s2202_s28, 1  ;;  %p183_p7 = scmp.eq.s32.totalorder %s182_s9, 0 }
   0xd   : > { %p2290_p8 = por %p202_p5, %p201_p3  ;;  %p268_p9 = scmp.lt.s32.totalorder %s2202_s28, 3 }
   0xe   : > { %s2296_s11 = scalar_select %p183_p7, %s2190_s25, %s185_s7  }
   0xf   : > { %p269_p10 = pnand %p1677_p6, %p268_p9 }
  0x10   : > { %v2301_v0 = vld [vmem:[%s2638_s2 + $0x10] sm:$0xff] (!%p269_p10)   ;;  %p320_p11 = scmp.lt.s32.totalorder (!%p269_p10), %s2194_s26, 1  ;;  %v2016_v1 = vld [vmem:[%s2638_s2 + $0x8] sm:$0xff] (!%p269_p10)   ;;  %v2020_v2 = vld [vmem:[%s2638_s2] sm:$0xff] (!%p269_p10)   ;;  %vm483_vm0 = vcmask (!%p269_p10), 130048   ;;  %vm727_vm2 = vcmask (!%p269_p10), 1046528  }
  0x11   : > { %272 = sbr.rel (%p269_p10) target bundleno = 534 (0x216), region = 44  ;;  %1837 = vmatprep.subr.bf16.mxu0 (!%p269_p10), %v2301_v0  ;;  %1801 = vmatprep.subr.bf16.mxu1 (!%p269_p10), %v2016_v1  ;;  %v2021_v3 = vld [vmem:[%s2638_s2 + $0x18] sm:$0xff] (!%p269_p10)   ;;  %vm408_vm1 = vsmask.f32 (!%p269_p10), 7424  ;;  %v2342_v11 = vld [vmem:[%s2638_s2 + $0x20] sm:$0xff] (!%p269_p10)   ;;  %vm1073_vm4 = vcmask (!%p269_p10), 1045504  }
  0x12   : > { %1838 = vmatpush3.bf16.msra.mxu0 (!%p269_p10), %v2301_v0  ;;  %1802 = vmatpush3.bf16.msra.mxu1 (!%p269_p10), %v2016_v1  ;;  %vm890_vm3 = vsmask.f32 (!%p269_p10), 6400  ;;  %s1328_s20 = sld [smem:[#allocation2]] (!%p269_p10)  ;;  %vm1469_vm5 = vcmask (!%p269_p10), 130112   ;;  %vm1476_vm6 = vcmask (!%p269_p10), 195712   ;;  %vm1483_vm7 = vcmask (!%p269_p10), 261312  }
  0x13   : > { %1819 = vmatprep.subr.bf16.mxu1 (!%p269_p10), %v2020_v2  ;;  %1855 = vmatprep.subr.bf16.mxu0 (!%p269_p10), %v2021_v3  ;;  %vm1490_vm8 = vcmask (!%p269_p10), 326912   ;;  %vm1497_vm9 = vcmask (!%p269_p10), 392512   ;;  %vm1504_vm10 = vcmask (!%p269_p10), 458112   ;;  %vm1511_vm11 = vcmask (!%p269_p10), 523712   ;;  %s313_s21 = sand.u32 (!%p269_p10), 1, %s2186_s24   ;;  %s1751_s22 = sshll.u32 (!%p269_p10), %s2194_s26, 4 }
  0x14   : > { %vm1518_vm12 = vcmask (!%p269_p10), 589312   ;;  %vm1525_vm13 = vcmask (!%p269_p10), 654912   ;;  %vm1532_vm14 = vcmask (!%p269_p10), 720512   ;;  %vm1539_vm15 = vcmask (!%p269_p10), 786112   ;;  %s314_s5 = scalar_lea.vmem (!%p269_p10), [#allocation3], %s313_s21  ;;  %s1572_s13 = scalar_lea.sflag (!%p269_p10), [#allocation4], %s313_s21 }
  0x15   : > { %s2204_s14 = smov (!%p269_p10), [#allocation3]  }
  0x18   : > { %s2309_s16 = scalar_select %p320_p11, %s2194_s26, 1 }
  0x1a   : > { %s1957_s19 = smul.u32 68, %s2309_s16 }
  0x1c   : > { %s2324_s29 = scalar_lea.vmem %s2636_s0, %s1957_s19  ;;  %s1755_s12 = sadd.s32 64, %s1957_s19 }
  0x1d   : > { %v2327_v4 = vld [vmem:[%s2324_s29] sm:$0xff]   ;;  %v2330_v5 = vld [vmem:[%s2324_s29 + $0x8] sm:$0xff]   ;;  %v2333_v6 = vld [vmem:[%s2324_s29 + $0x10] sm:$0xff]   ;;  %s342_s15 = scalar_lea.vmem %s2637_s1, %s1755_s12  ;;  %s2589_s12 = scalar_lea.hbm %s2642_s6, %s1751_s22 }
  0x1e   : > { %v728_v7 = vrot.slane %v2327_v4, 1  ;;  %v729_v8 = vrot.slane %v2330_v5, 1  ;;  %v410_v9 = vshrl.u32 %v2327_v4, 16  ;;  %v412_v10 = vshll.u32 %v2327_v4, 16  ;;  %v2350_v18 = vld [vmem:[%s2324_s29 + $0x18] sm:$0xff]   ;;  %v2353_v19 = vld [vmem:[%s2324_s29 + $0x20] sm:$0xff]  }
  0x1f   : > { %v731_v12 = vrot.slane %v2333_v6, 1  ;;  %v417_v13 = vshll.u32 %v2330_v5, 16  ;;  %v421_v14 = vshrl.u32 %v2330_v5, 16  ;;  %v425_v15 = vshll.u32 %v2333_v6, 16  ;;  %v2364_v32 = vld [vmem:[%s2324_s29 + $0x28] sm:$0xff]   ;;  %v2379_v45 = vld [vmem:[%s2324_s29 + $0x30] sm:$0xff]  }
  0x20   : > { %v730_v16 = vsel %vm727_vm2, %v728_v7, %v729_v8  ;;  %v414_v17 = vrot.slane %v412_v10, 1  ;;  %v891_v22 = vrot.slane %v410_v9, 1  ;;  %v733_v26 = vrot.slane %v2350_v18, 1  ;;  %v2385_v53 = vld [vmem:[%s2324_s29 + $0x38] sm:$0xff]   ;;  %s1585_s29 = sshll.u32 %s314_s5, 4  ;;  %s2591_s29 = int_to_ptr.vmem [resolvable:$true] %s1585_s29 }
  0x21   : > { %1839 = vmatprep.mubr.msk.bf16.mxu0 %vm483_vm0, %v730_v16  ;;  %v732_v20 = vsel %vm727_vm2, %v729_v8, %v731_v12  ;;  %v419_v21 = vrot.slane %v417_v13, 1  ;;  %v427_v23 = vrot.slane %v425_v15, 1  ;;  %v895_v25 = vrot.slane %v417_v13, 2  ;;  %v2406_v16 = vld [vmem:[%s342_s15] sm:$0xf]  ;;  %s2124_s26 = scalar_lea.vmem %s2591_s29, 16 }
  0x22   : > { %1840 = vmatmul.mubr.msk.bf16.vlgmr.msra.gmra.mrb[0].mxu0 %vm483_vm0, %v732_v20  ;;  %v415_v24 = vor.u32 %v414_v17, %v410_v9  ;;  %v735_v27 = vrot.slane %v2353_v19, 1  ;;  %v429_v29 = vshrl.u32 %v2333_v6, 16  ;;  %v433_v30 = vshll.u32 %v2350_v18, 16  ;;  %p2125_p12 = scmp.ne.s32.totalorder %s2591_s29, %s2124_s26  ;;  %s2128_s15 = sshll.u32 %s2204_s14, 4  ;;  %s2129_s15 = int_to_ptr.vmem [resolvable:$false] %s2128_s15 }
  0x23   : > { %v423_v28 = vor.u32 %v421_v14, %v419_v21  ;;  %1856 = vmatpush3.bf16.msra.mxu0 %v2021_v3  ;;  %v437_v31 = vshrl.u32 %v2350_v18, 16  ;;  %v899_v34 = vrot.slane %v425_v15, 2  ;;  %v734_v35 = vsel %vm727_vm2, %v731_v12, %v733_v26  ;;  %s2130_s16 = scalar_lea.vmem %s2129_s15, 32  ;;  %p2131_p1 = scmp.lt.s32.totalorder %s2591_s29, %s2129_s15 }
  0x24   : > { %v420_v33 = vsel %vm408_vm1, %v415_v24, %v419_v21  ;;  %v441_v36 = vshll.u32 %v2353_v19, 16  ;;  %1873 = vmatprep.subr.bf16.mxu0 %v2342_v11  ;;  %1843 = vmatprep.mubr.msk.bf16.mxu0 %vm483_vm0, %v734_v35  ;;  %v736_v38 = vsel %vm727_vm2, %v733_v26, %v735_v27  ;;  %v431_v39 = vor.u32 %v429_v29, %v427_v23  ;;  %p2126_p13 = pnand %p2125_p12, %p2283_p4  ;;  %p2132_p2 = scmp.lt.s32.totalorder %s2130_s16, %s2124_s26 }
  0x25   : > { %1803 = vmatprep.mubr.msk.bf16.mxu1 %vm483_vm0, %v420_v33  ;;  %v428_v37 = vsel %vm408_vm1, %v423_v28, %v427_v23  ;;  %v435_v40 = vrot.slane %v433_v30, 1  ;;  %v892_v42 = vrot.slane %v412_v10, 2  ;;  %v894_v43 = vrot.slane %v421_v14, 1 }
  0x26   : > { %1804 = vmatmul.mubr.msk.bf16.vlgmr.msra.gmra.mrb[0].mxu1 %vm483_vm0, %v428_v37  ;;  %v443_v41 = vrot.slane %v441_v36, 1  ;;  %v445_v44 = vshrl.u32 %v2353_v19, 16  ;;  %v898_v47 = vrot.slane %v429_v29, 1  ;;  %v449_v49 = vshll.u32 %v2364_v32, 16  ;;  %p2127_p0 = pneg %p2126_p13  ;;  %p2133_p3 = por %p2132_p2, %p2131_p1 }
  0x27   : > { %1820 = vmatpush3.bf16.msra.mxu1 %v2020_v2  ;;  %v436_v46 = vsel %vm408_vm1, %v431_v39, %v435_v40  ;;  %v439_v48 = vor.u32 %v437_v31, %v435_v40  ;;  %v893_v50 = vor.u32 %v892_v42, %v891_v22  ;;  %v896_v51 = vor.u32 %v895_v25, %v894_v43 }
  0x28   : > { %1807 = vmatprep.mubr.msk.bf16.mxu1 %vm483_vm0, %v436_v46  ;;  %v447_v52 = vor.u32 %v445_v44, %v443_v41  ;;  %1891 = vmatprep.subr.bf16.mxu1 %v2301_v0  ;;  %v451_v54 = vrot.slane %v449_v49, 1  ;;  %v902_v55 = vrot.slane %v437_v31, 1  ;;  %v457_v57 = vshll.u32 %v2379_v45, 16  ;;  %p2134_p5 = pnand %p2133_p3, %p2127_p0 }
  0x29   : > { %v897_v56 = vsel %vm890_vm3, %v893_v50, %v896_v51  ;;  %v903_v58 = vrot.slane %v433_v30, 2  ;;  %v444_v59 = vsel %vm408_vm1, %v439_v48, %v443_v41  ;;  %v900_v60 = vor.u32 %v899_v34, %v898_v47 }
  0x2a   : > { %1844 = vmatmul.mubr.msk.bf16.gmra.mrb[4].mxu0 %vm483_vm0, %v736_v38  ;;  %v453_v61 = vshrl.u32 %v2364_v32, 16  ;;  %v452_v62 = vsel %vm408_vm1, %v447_v52, %v451_v54  ;;  %v461_v1 = vshrl.u32 %v2379_v45, 16  ;;  %v465_v2 = vshll.u32 %v2385_v53, 16 }
  0x2b   : > { %1857 = vmatprep.mubr.msk.bf16.mxu0 %vm483_vm0, %v897_v56  ;;  %v904_v63 = vor.u32 %v903_v58, %v902_v55  ;;  %v459_v3 = vrot.slane %v457_v57, 1  ;;  %v906_v7 = vrot.slane %v445_v44, 1  ;;  %v907_v8 = vrot.slane %v441_v36, 2 }
  0x2c   : > { %v901_v9 = vsel %vm890_vm3, %v896_v51, %v900_v60  ;;  %v455_v10 = vor.u32 %v453_v61, %v451_v54  ;;  %v910_v12 = vrot.slane %v453_v61, 1  ;;  %v467_v15 = vrot.slane %v465_v2, 1 }
  0x2d   : > { %v905_v13 = vsel %vm890_vm3, %v900_v60, %v904_v63  ;;  %v463_v14 = vor.u32 %v461_v1, %v459_v3  ;;  %v911_v17 = vrot.slane %v449_v49, 2  ;;  %v908_v20 = vor.u32 %v907_v8, %v906_v7 }
  0x2e   : > { %1808 = vmatmul.mubr.msk.bf16.gmra.mrb[4].mxu1 %vm483_vm0, %v444_v59  ;;  %v460_v21 = vsel %vm408_vm1, %v455_v10, %v459_v3  ;;  %v469_v22 = vshrl.u32 %v2385_v53, 16  ;;  %v473_v23 = vshll.u32 %v2406_v16, 16  ;;  %v914_v30 = vrot.slane %v461_v1, 1 }
  0x2f   : > { %1811 = vmatprep.mubr.msk.bf16.mxu1 %vm483_vm0, %v452_v62  ;;  %v468_v24 = vsel %vm408_vm1, %v463_v14, %v467_v15  ;;  %v912_v25 = vor.u32 %v911_v17, %v910_v12  ;;  %v909_v26 = vsel %vm890_vm3, %v904_v63, %v908_v20  ;;  %v915_v31 = vrot.slane %v457_v57, 2  ;;  %v2489_v12 = vld [vmem:[%s2639_s3] ss:$0 sm:$0xff] }
  0x30   : > { %v471_v28 = vor.u32 %v469_v22, %v467_v15  ;;  %v475_v29 = vrot.slane %v473_v23, 1  ;;  %v918_v33 = vrot.slane %v469_v22, 1  ;;  %v919_v34 = vrot.slane %v465_v2, 2 }
  0x31   : > { %v916_v36 = vor.u32 %v915_v31, %v914_v30  ;;  %v922_v37 = vshrl.u32 %v2406_v16, 16  ;;  %v925_v41 = vrot.slane %v473_v23, 2  ;;  %v1074_v44 = vrot.slane %v2327_v4, 2 }
  0x32   : > { %1858 = vmatmul.mubr.msk.bf16.vlgmr.msra.gmra.mrb[0].mxu0 %vm483_vm0, %v901_v9  ;;  %v476_v35 = vsel %vm408_vm1, %v471_v28, %v475_v29  ;;  %v920_v38 = vor.u32 %v919_v34, %v918_v33  ;;  %v1075_v46 = vrot.slane %v2330_v5, 2  ;;  %v1079_v49 = vrot.slane %v2350_v18, 2 }
  0x33   : > { %1874 = vmatpush3.bf16.msra.mxu0 %v2342_v11  ;;  %1861 = vmatprep.mubr.msk.bf16.mxu0 %vm483_vm0, %v905_v13  ;;  %v913_v11 = vsel %vm890_vm3, %v908_v20, %v912_v25  ;;  %v917_v39 = vsel %vm890_vm3, %v912_v25, %v916_v36  ;;  %v924_v40 = vrot.slane %v922_v37, 1  ;;  %v1081_v50 = vrot.slane %v2353_v19, 2 }
  0x34   : > { %v921_v42 = vsel %vm890_vm3, %v916_v36, %v920_v38  ;;  %v1076_v48 = vsel %vm1073_vm4, %v1074_v44, %v1075_v46  ;;  %v737_v52 = vrot.slane %v2364_v32, 1  ;;  %v1085_v54 = vrot.slane %v2379_v45, 2 }
  0x35   : > { %v926_v43 = vor.u32 %v925_v41, %v924_v40  ;;  %v1087_v56 = vrot.slane %v2385_v53, 2  ;;  %v741_v59 = vrot.slane %v2385_v53, 1  ;;  %vm1553_vm1 = vcmask 917312  }
  0x36   : > { %1812 = vmatmul.mubr.msk.bf16.gmra.mrb[8].mxu1 %vm483_vm0, %v460_v21  ;;  %v738_v55 = vsel %vm727_vm2, %v735_v27, %v737_v52  ;;  %v1089_v27 = vrot.slane %v2406_v16, 2 }
  0x37   : > { %1815 = vmatprep.mubr.msk.bf16.mxu1 %vm483_vm0, %v468_v24  ;;  %v927_v47 = vsel %vm890_vm3, %v920_v38, %v926_v43  ;;  %v1088_v58 = vsel %vm1073_vm4, %v1085_v54, %v1087_v56  ;;  %v2501_v38 = vld [vmem:[%s2640_s4] ss:$0 sm:$0xff]  ;;  %vm1567_vm3 = vcmask 1048512  }
  0x38   : > { %v1090_v61 = vsel %vm1073_vm4, %v1087_v56, %v1089_v27 }
  0x3a   : > { %1862 = vmatmul.mubr.msk.bf16.gmra.mrb[4].mxu0 %vm483_vm0, %v909_v26 }
  0x3b   : > { %1865 = vmatprep.mubr.msk.bf16.mxu0 %vm483_vm0, %v913_v11 }
  0x3e   : > { %1816 = vmatmul.mubr.msk.bf16.gmra.mrb[12].mxu1 %vm483_vm0, %v476_v35 }
  0x3f   : > { %1821 = vmatprep.mubr.msk.bf16.mxu1 %vm483_vm0, %v2327_v4  ;;  %v1077_v4 = vrot.slane %v2333_v6, 2 }
  0x42   : > { %1866 = vmatmul.mubr.msk.bf16.gmra.mrb[8].mxu0 %vm483_vm0, %v917_v39 }
  0x43   : > { %1869 = vmatprep.mubr.msk.bf16.mxu0 %vm483_vm0, %v921_v42 }
  0x46   : > { %1822 = vmatmul.mubr.msk.bf16.vlgmr.msra.gmra.mrb[0].mxu1 %vm483_vm0, %v2330_v5  ;;  %v1080_v5 = vsel %vm1073_vm4, %v1077_v4, %v1079_v49 }
  0x47   : > { %1892 = vmatpush3.bf16.msra.mxu1 %v2301_v0  ;;  %1825 = vmatprep.mubr.msk.bf16.mxu1 %vm483_vm0, %v2333_v6  ;;  %v1078_v0 = vsel %vm1073_vm4, %v1075_v46, %v1077_v4  ;;  %v1083_v6 = vrot.slane %v2364_v32, 2 }
  0x49   : > { %v1084_v51 = vsel %vm1073_vm4, %v1081_v50, %v1083_v6  ;;  %v1086_v57 = vsel %vm1073_vm4, %v1083_v6, %v1085_v54 }
  0x4a   : > { %1870 = vmatmul.mubr.msk.bf16.gmra.mrb[12].mxu0 %vm483_vm0, %v927_v47 }
  0x4b   : > { %1875 = vmatprep.mubr.msk.bf16.mxu0 %vm483_vm0, %v1076_v48 }
  0x4e   : > { %1826 = vmatmul.mubr.msk.bf16.gmra.mrb[4].mxu1 %vm483_vm0, %v2350_v18  ;;  %v1082_v18 = vsel %vm1073_vm4, %v1079_v49, %v1081_v50 }
  0x4f   : > { %1829 = vmatprep.mubr.msk.bf16.mxu1 %vm483_vm0, %v2353_v19 }
  0x52   : > { %1876 = vmatmul.mubr.msk.bf16.vlgmr.msra.gmra.mrb[0].mxu0 %vm483_vm0, %v1078_v0 }
  0x53   : > { %1879 = vmatprep.mubr.msk.bf16.mxu0 %vm483_vm0, %v1080_v5 }
  0x56   : > { %1830 = vmatmul.mubr.msk.bf16.gmra.mrb[8].mxu1 %vm483_vm0, %v2364_v32  ;;  %v739_v32 = vrot.slane %v2379_v45, 1 }
  0x57   : > { %1833 = vmatprep.mubr.msk.bf16.mxu1 %vm483_vm0, %v2379_v45  ;;  %v743_v45 = vrot.slane %v2406_v16, 1 }
  0x58   : > { %v740_v19 = vsel %vm727_vm2, %v737_v52, %v739_v32  ;;  %v742_v60 = vsel %vm727_vm2, %v739_v32, %v741_v59 }
  0x5a   : > { %1880 = vmatmul.mubr.msk.bf16.gmra.mrb[4].mxu0 %vm483_vm0, %v1082_v18 }
  0x5b   : > { %1883 = vmatprep.mubr.msk.bf16.mxu0 %vm483_vm0, %v1084_v51 }
  0x5e   : > { %1834 = vmatmul.mubr.msk.bf16.gmra.mrb[12].mxu1 %vm483_vm0, %v2385_v53  ;;  %v744_v53 = vsel %vm727_vm2, %v741_v59, %v743_v45  ;;  %vm1560_vm2 = vcmask 982912  }
  0x5f   : > { %1847 = vmatprep.mubr.msk.bf16.mxu1 %vm483_vm0, %v738_v55 }
  0x62   : > { %1884 = vmatmul.mubr.msk.bf16.gmra.mrb[8].mxu0 %vm483_vm0, %v1086_v57 }
  0x63   : > { %1887 = vmatprep.mubr.msk.bf16.mxu0 %vm483_vm0, %v1088_v58 }
  0x66   : > { %1848 = vmatmul.mubr.msk.bf16.vlgmr.msra.gmra.mrb[8].mxu1 %vm483_vm0, %v740_v19 }
  0x67   : > { %1851 = vmatprep.mubr.msk.bf16.mxu1 %vm483_vm0, %v742_v60 }
  0x6a   : > { %1888 = vmatmul.mubr.msk.bf16.gmra.mrb[12].mxu0 %vm483_vm0, %v1090_v61 }
  0x6e   : > { %1852 = vmatmul.mubr.msk.bf16.gmra.mrb[12].mxu1 %vm483_vm0, %v744_v53  ;;  %vm1546_vm0 = vcmask 851712  }
 0x119   : > { %v1823_v62 = vpop.f32.mrb[0].mxu1 }
 0x11a   : > { %v661_v63 = vpop.f32.mrb[1].mxu1 }
 0x11b   : > { %v1824_v1 = vpop.f32.mrb[2].mxu1 }
 0x11c   : > { %v664_v2 = vpop.f32.mrb[3].mxu1 }
 0x121   : > { %v1827_v3 = vpop.f32.mrb[4].mxu1 }
 0x122   : > { %v677_v7 = vpop.f32.mrb[5].mxu1 }
 0x123   : > { %v1828_v8 = vpop.f32.mrb[6].mxu1 }
 0x124   : > { %v680_v9 = vpop.f32.mrb[7].mxu1 }
 0x125   : > { %v1877_v10 = vpop.f32.mrb[0].mxu0 }
 0x126   : > { %v1893_v13 = vadd.f32 %v1877_v10, %v1823_v62  ;;  %v1155_v14 = vpop.f32.mrb[1].mxu0 }
 0x127   : > { %v1894_v15 = vadd.f32 %v1155_v14, %v661_v63  ;;  %v1878_v16 = vpop.f32.mrb[2].mxu0 }
 0x128   : > { %v1243_v17 = vadd.f32 %v1893_v13, %v2489_v12  ;;  %v1895_v20 = vadd.f32 %v1878_v16, %v1824_v1  ;;  %v1158_v21 = vpop.f32.mrb[3].mxu0 }
 0x129   : > { %v1241_v22 = vadd.f32 %v1894_v15, %v2489_v12  ;;  %v1896_v23 = vadd.f32 %v1158_v21, %v664_v2 }
 0x12a   : > { %2028 = vtanh.f32 %v1243_v17  ;;  %v1244_v24 = vadd.f32 %v1895_v20, %v2489_v12 }
 0x12b   : > { %2030 = vtanh.f32 %v1241_v22  ;;  %v1242_v25 = vadd.f32 %v1896_v23, %v2489_v12 }
 0x12c   : > { %2032 = vtanh.f32 %v1244_v24 }
 0x12d   : > { %2034 = vtanh.f32 %v1242_v25  ;;  %v1881_v26 = vpop.f32.mrb[4].mxu0 }
 0x12e   : > { %v1897_v28 = vadd.f32 %v1881_v26, %v1827_v3  ;;  %v1171_v29 = vpop.f32.mrb[5].mxu0 }
 0x12f   : > { %v1898_v30 = vadd.f32 %v1171_v29, %v677_v7  ;;  %v1882_v31 = vpop.f32.mrb[6].mxu0 }
 0x130   : > { %v1247_v11 = vadd.f32 %v1897_v28, %v2489_v12  ;;  %v1899_v33 = vadd.f32 %v1882_v31, %v1828_v8  ;;  %v1174_v34 = vpop.f32.mrb[7].mxu0 }
 0x131   : > { %v1245_v35 = vadd.f32 %v1898_v30, %v2489_v12  ;;  %v1900_v36 = vadd.f32 %v1174_v34, %v680_v9 }
 0x132   : > { %2036 = vtanh.f32 %v1247_v11  ;;  %v1248_v37 = vadd.f32 %v1899_v33, %v2489_v12 }
 0x133   : > { %v1246_v39 = vadd.f32 %v1900_v36, %v2489_v12 }
 0x134   : > { %v2029_v40 = vpop.eup %2028  ;;  %2038 = vtanh.f32 %v1248_v37 }
 0x135   : > { %v2031_v41 = vpop.eup %2030  ;;  %2040 = vtanh.f32 %v1245_v35  ;;  %v1885_v42 = vpop.f32.mrb[8].mxu0  ;;  %v1282_v43 = vmul.f32 %v2029_v40, %v2501_v38 }
 0x136   : > { %v2033_v44 = vpop.eup %2032  ;;  %2042 = vtanh.f32 %v1246_v39  ;;  %v1187_v46 = vpop.f32.mrb[9].mxu0  ;;  %v1280_v47 = vmul.f32 %v2031_v41, %v2501_v38  ;;  %v2528_v41 = vstv %s1328_s20 }
 0x137   : > { %v2035_v48 = vpop.eup %2034  ;;  %v1886_v4 = vpop.f32.mrb[10].mxu0  ;;  %1300 = vadd.xlane.f32.xlu1 %v1282_v43  ;;  %v1283_v5 = vmul.f32 %v2033_v44, %v2501_v38 }
 0x138   : > { %v1190_v49 = vpop.f32.mrb[11].mxu0  ;;  %1296 = vadd.xlane.f32.xlu0 %v1280_v47  ;;  %v1281_v18 = vmul.f32 %v2035_v48, %v2501_v38 }
 0x139   : > { %v1849_v0 = vpop.f32.mrb[8].mxu1 }
 0x13a   : > { %v1901_v50 = vadd.f32 %v1885_v42, %v1849_v0  ;;  %v841_v6 = vpop.f32.mrb[9].mxu1 }
 0x13b   : > { %v1902_v51 = vadd.f32 %v1187_v46, %v841_v6  ;;  %1302 = vadd.xlane.f32.xlu1 %v1283_v5  ;;  %v1850_v52 = vpop.f32.mrb[10].mxu1 }
 0x13c   : > { %v2037_v54 = vpop.eup %2036  ;;  %v1251_v55 = vadd.f32 %v1901_v50, %v2489_v12  ;;  %v1903_v56 = vadd.f32 %v1886_v4, %v1850_v52  ;;  %1298 = vadd.xlane.f32.xlu0 %v1281_v18  ;;  %v844_v57 = vpop.f32.mrb[11].mxu1 }
 0x13d   : > { %v1249_v32 = vadd.f32 %v1902_v51, %v2489_v12  ;;  %v1904_v58 = vadd.f32 %v1190_v49, %v844_v57  ;;  %v1889_v59 = vpop.f32.mrb[12].mxu0  ;;  %v1286_v19 = vmul.f32 %v2037_v54, %v2501_v38 }
 0x13e   : > { %v2039_v27 = vpop.eup %2038  ;;  %2044 = vtanh.f32 %v1251_v55  ;;  %v1252_v60 = vadd.f32 %v1903_v56, %v2489_v12  ;;  %v1203_v61 = vpop.f32.mrb[13].mxu0 }
 0x13f   : > { %v2041_v45 = vpop.eup %2040  ;;  %2046 = vtanh.f32 %v1249_v32  ;;  %v1250_v53 = vadd.f32 %v1904_v58, %v2489_v12  ;;  %v1890_v62 = vpop.f32.mrb[14].mxu0  ;;  %v1287_v63 = vmul.f32 %v2039_v27, %v2501_v38 }
 0x140   : > { %v2043_v1 = vpop.eup %2042  ;;  %2048 = vtanh.f32 %v1252_v60  ;;  %v1206_v2 = vpop.f32.mrb[15].mxu0  ;;  %1308 = vadd.xlane.f32.xlu0 %v1286_v19  ;;  %v1284_v9 = vmul.f32 %v2041_v45, %v2501_v38 }
 0x141   : > { %1310 = vadd.xlane.f32.xlu1 %v1287_v63  ;;  %v1853_v3 = vpop.f32.mrb[12].mxu1  ;;  %2050 = vtanh.f32 %v1250_v53  ;;  %v1285_v14 = vmul.f32 %v2043_v1, %v2501_v38  ;;  %v1458_v63 = vlaneseq }
 0x142   : > { %v1905_v7 = vadd.f32 %v1889_v59, %v1853_v3  ;;  %v857_v8 = vpop.f32.mrb[13].mxu1 }
 0x143   : > { %v1906_v10 = vadd.f32 %v1203_v61, %v857_v8  ;;  %v1854_v13 = vpop.f32.mrb[14].mxu1 }
 0x144   : > { %v1255_v15 = vadd.f32 %v1905_v7, %v2489_v12  ;;  %v1907_v16 = vadd.f32 %v1890_v62, %v1854_v13  ;;  %1304 = vadd.xlane.f32.xlu0 %v1284_v9  ;;  %v860_v17 = vpop.f32.mrb[15].mxu1 }
 0x145   : > { %v1253_v20 = vadd.f32 %v1906_v10, %v2489_v12  ;;  %v1908_v21 = vadd.f32 %v1206_v2, %v860_v17  ;;  %1306 = vadd.xlane.f32.xlu1 %v1285_v14  ;;  %v2540_v14 = vand.u32 127, %v1458_v63 }
 0x146   : > { %v1256_v22 = vadd.f32 %v1907_v16, %v2489_v12 }
 0x147   : > { %2052 = vtanh.f32 %v1253_v20  ;;  %v1254_v23 = vadd.f32 %v1908_v21, %v2489_v12  ;;  %v1464_v20 = vadd.s32 4294967288, %v2540_v14 }
 0x148   : > { %v2045_v24 = vpop.eup %2044  ;;  %2054 = vtanh.f32 %v1255_v15 }
 0x149   : > { %v2047_v25 = vpop.eup %2046  ;;  %2056 = vtanh.f32 %v1254_v23  ;;  %v1290_v26 = vmul.f32 %v2045_v24, %v2501_v38 }
 0x14a   : > { %v2049_v28 = vpop.eup %2048  ;;  %2058 = vtanh.f32 %v1256_v22  ;;  %v1288_v31 = vmul.f32 %v2047_v25, %v2501_v38  ;;  %v2545_v25 = vshrl.u32 %v1458_v63, 7 }
 0x14b   : > { %1316 = vadd.xlane.f32.xlu0 %v1290_v26  ;;  %v1291_v29 = vmul.f32 %v2049_v28, %v2501_v38  ;;  %v2051_v30 = vpop.eup %2050 }
 0x14c   : > { %v1289_v11 = vmul.f32 %v2051_v30, %v2501_v38 }
 0x14d   : > { %1318 = vadd.xlane.f32.xlu1 %v1291_v29 }
 0x14f   : > { %1312 = vadd.xlane.f32.xlu0 %v1288_v31 }
 0x151   : > { %v2053_v33 = vpop.eup %2052  ;;  %1314 = vadd.xlane.f32.xlu1 %v1289_v11  ;;  %v1471_v11 = vadd.s32 4294967280, %v2540_v14 }
 0x152   : > { %v2055_v12 = vpop.eup %2054  ;;  %v1292_v34 = vmul.f32 %v2053_v33, %v2501_v38  ;;  %v1467_v33 = vsub.s32 %v1464_v20, %v2545_v25 }
 0x153   : > { %v2057_v35 = vpop.eup %2056  ;;  %v1294_v39 = vmul.f32 %v2055_v12, %v2501_v38 }
 0x154   : > { %1320 = vadd.xlane.f32.xlu0 %v1292_v34  ;;  %v1293_v36 = vmul.f32 %v2057_v35, %v2501_v38  ;;  %v2059_v37 = vpop.eup %2058 }
 0x155   : > { %v1295_v40 = vmul.f32 %v2059_v37, %v2501_v38 }
 0x156   : > { %1322 = vadd.xlane.f32.xlu1 %v1293_v36 }
 0x158   : > { %1324 = vadd.xlane.f32.xlu0 %v1294_v39 }
 0x15a   : > { %1326 = vadd.xlane.f32.xlu1 %v1295_v40  ;;  %v1462_v40 = vsub.s32 %v2540_v14, %v2545_v25 }
 0x1c4   : > { %v1301_v42 = vpop.xlane.xlu1 %1300 }
 0x1c5   : > { %v1332_v43 = vadd.f32 %v2528_v41, %v1301_v42  ;;  %v1297_v44 = vpop.xlane.xlu0 %1296  ;;  %v1478_v42 = vadd.s32 4294967272, %v2540_v14 }
 0x1c6   : > { %v1330_v46 = vadd.f32 %v2528_v41, %v1297_v44 }
 0x1c7   : > { %v1737_v4 = vmul.f32 -1.442695, %v1332_v43 }
 0x1c8   : > { %v1735_v47 = vmul.f32 -1.442695, %v1330_v46  ;;  %v1303_v48 = vpop.xlane.xlu1 %1302 }
 0x1c9   : > { %v1333_v49 = vadd.f32 %v2528_v41, %v1303_v48  ;;  %v1299_v0 = vpop.xlane.xlu0 %1298 }
 0x1ca   : > { %v1331_v5 = vadd.f32 %v2528_v41, %v1299_v0  ;;  %2060 = vpow2.f32 %v1735_v47  ;;  %v1474_v0 = vsub.s32 %v1471_v11, %v2545_v25 }
 0x1cb   : > { %v1738_v38 = vmul.f32 -1.442695, %v1333_v49  ;;  %2062 = vpow2.f32 %v1737_v4 }
 0x1cc   : > { %v1736_v50 = vmul.f32 -1.442695, %v1331_v5 }
 0x1cd   : > { %v1309_v6 = vpop.xlane.xlu0 %1308 }
 0x1ce   : > { %2064 = vpow2.f32 %v1736_v50  ;;  %v1336_v18 = vadd.f32 %v2528_v41, %v1309_v6  ;;  %v1311_v51 = vpop.xlane.xlu1 %1310  ;;  %v1485_v50 = vadd.s32 4294967264, %v2540_v14 }
 0x1cf   : > { %2066 = vpow2.f32 %v1738_v38  ;;  %v1337_v52 = vadd.f32 %v2528_v41, %v1311_v51 }
 0x1d0   : > { %v1741_v55 = vmul.f32 -1.442695, %v1336_v18 }
 0x1d1   : > { %v1305_v54 = vpop.xlane.xlu0 %1304  ;;  %v1742_v32 = vmul.f32 -1.442695, %v1337_v52 }
 0x1d2   : > { %v1334_v56 = vadd.f32 %v2528_v41, %v1305_v54  ;;  %v1307_v57 = vpop.xlane.xlu1 %1306  ;;  %2068 = vpow2.f32 %v1741_v55  ;;  %v1492_v54 = vadd.s32 4294967256, %v2540_v14 }
 0x1d3   : > { %v1335_v58 = vadd.f32 %v2528_v41, %v1307_v57  ;;  %2070 = vpow2.f32 %v1742_v32  ;;  %v1481_v57 = vsub.s32 %v1478_v42, %v2545_v25  ;;  %v1541_v42 = vadd.s32 4294967200, %v2540_v14 }
 0x1d4   : > { %v1739_v59 = vmul.f32 -1.442695, %v1334_v56  ;;  %v2061_v19 = vpop.eup %2060 }
 0x1d5   : > { %v1740_v27 = vmul.f32 -1.442695, %v1335_v58  ;;  %v2063_v60 = vpop.eup %2062  ;;  %v1394_v45 = vadd.f32 1.0, %v2061_v19 }
 0x1d6   : > { %2072 = vpow2.f32 %v1739_v59  ;;  %v1396_v7 = vadd.f32 1.0, %v2063_v60  ;;  %v1488_v60 = vsub.s32 %v1485_v50, %v2545_v25 }
 0x1d7   : > { %2074 = vpow2.f32 %v1740_v27 }
 0x1d8   : > { %v2065_v61 = vpop.eup %2064  ;;  %v1317_v53 = vpop.xlane.xlu0 %1316 }
 0x1d9   : > { %v2067_v62 = vpop.eup %2066  ;;  %v1395_v1 = vadd.f32 1.0, %v2065_v61  ;;  %v1340_v2 = vadd.f32 %v2528_v41, %v1317_v53  ;;  %v1499_v53 = vadd.s32 4294967248, %v2540_v14 }
 0x1da   : > { %v1319_v3 = vpop.xlane.xlu1 %1318  ;;  %v1397_v10 = vadd.f32 1.0, %v2067_v62 }
 0x1db   : > { %2076 = vrcp.f32 %v1395_v1  ;;  %v1745_v8 = vmul.f32 -1.442695, %v1340_v2  ;;  %v1341_v9 = vadd.f32 %v2528_v41, %v1319_v3 }
 0x1dc   : > { %2078 = vrcp.f32 %v1394_v45  ;;  %v1313_v13 = vpop.xlane.xlu0 %1312  ;;  %v2069_v23 = vpop.eup %2068 }
 0x1dd   : > { %2080 = vpow2.f32 %v1745_v8  ;;  %v1746_v15 = vmul.f32 -1.442695, %v1341_v9  ;;  %v1338_v16 = vadd.f32 %v2528_v41, %v1313_v13  ;;  %v2071_v24 = vpop.eup %2070  ;;  %v1400_v43 = vadd.f32 1.0, %v2069_v23 }
 0x1de   : > { %v1315_v17 = vpop.xlane.xlu1 %1314  ;;  %2082 = vrcp.f32 %v1396_v7  ;;  %v1401_v47 = vadd.f32 1.0, %v2071_v24  ;;  %v1506_v8 = vadd.s32 4294967240, %v2540_v14  ;;  %v1502_v13 = vsub.s32 %v1499_v53, %v2545_v25 }
 0x1df   : > { %v1743_v21 = vmul.f32 -1.442695, %v1338_v16  ;;  %v1339_v22 = vadd.f32 %v2528_v41, %v1315_v17  ;;  %2084 = vrcp.f32 %v1397_v10  ;;  %v1527_v24 = vadd.s32 4294967216, %v2540_v14 }
 0x1e0   : > { %2086 = vpow2.f32 %v1746_v15  ;;  %v2073_v29 = vpop.eup %2072 }
 0x1e1   : > { %v1744_v26 = vmul.f32 -1.442695, %v1339_v22  ;;  %v1321_v28 = vpop.xlane.xlu0 %1320  ;;  %2088 = vpow2.f32 %v1743_v21  ;;  %v2075_v31 = vpop.eup %2074  ;;  %v1398_v12 = vadd.f32 1.0, %v2073_v29  ;;  %v1513_v21 = vadd.s32 4294967232, %v2540_v14 }
 0x1e2   : > { %v1342_v30 = vadd.f32 %v2528_v41, %v1321_v28  ;;  %v1399_v35 = vadd.f32 1.0, %v2075_v31 }
 0x1e3   : > { %2090 = vpow2.f32 %v1744_v26  ;;  %v1323_v34 = vpop.xlane.xlu1 %1322  ;;  %v1520_v26 = vadd.s32 4294967224, %v2540_v14 }
 0x1e4   : > { %v1747_v36 = vmul.f32 -1.442695, %v1342_v30  ;;  %v1343_v37 = vadd.f32 %v2528_v41, %v1323_v34  ;;  %2092 = vrcp.f32 %v1398_v12  ;;  %v1509_v30 = vsub.s32 %v1506_v8, %v2545_v25 }
 0x1e5   : > { %v2077_v39 = vpop.eup %2076  ;;  %v1325_v44 = vpop.xlane.xlu0 %1324  ;;  %2094 = vrcp.f32 %v1399_v35  ;;  %v1516_v35 = vsub.s32 %v1513_v21, %v2545_v25 }
 0x1e6   : > { %v2079_v46 = vpop.eup %2078  ;;  %v1748_v48 = vmul.f32 -1.442695, %v1343_v37  ;;  %v1344_v4 = vadd.f32 %v2528_v41, %v1325_v44  ;;  %v1468_v5 = vrot.slane %v2077_v39, %v1467_v33  ;;  %2096 = vpow2.f32 %v1747_v36 }
 0x1e7   : > { %v2081_v49 = vpop.eup %2080  ;;  %v1327_v38 = vpop.xlane.xlu1 %1326  ;;  %v1463_v52 = vrot.slane %v2079_v46, %v1462_v40  ;;  %v1534_v33 = vadd.s32 4294967208, %v2540_v14  ;;  %v1530_v39 = vsub.s32 %v1527_v24, %v2545_v25  ;;  %v1523_v40 = vsub.s32 %v1520_v26, %v2545_v25 }
 0x1e8   : > { %v1404_v6 = vadd.f32 1.0, %v2081_v49  ;;  %2098 = vpow2.f32 %v1748_v48  ;;  %v1749_v18 = vmul.f32 -1.442695, %v1344_v4  ;;  %v2083_v51 = vpop.eup %2082  ;;  %v1345_v55 = vadd.f32 %v2528_v41, %v1327_v38 }
 0x1e9   : > { %2100 = vrcp.f32 %v1400_v43  ;;  %v2085_v56 = vpop.eup %2084  ;;  %v1470_v58 = vsel %vm1469_vm5, %v1468_v5, %v1463_v52  ;;  %v1475_v27 = vrot.slane %v2083_v51, %v1474_v0  ;;  %v1495_v41 = vsub.s32 %v1492_v54, %v2545_v25 }
 0x1ea   : > { %2102 = vrcp.f32 %v1401_v47  ;;  %v2087_v32 = vpop.eup %2086  ;;  %v1750_v59 = vmul.f32 -1.442695, %v1345_v55  ;;  %v1482_v3 = vrot.slane %v2085_v56, %v1481_v57  ;;  %v1548_v47 = vadd.s32 4294967192, %v2540_v14 }
 0x1eb   : > { %2104 = vpow2.f32 %v1749_v18  ;;  %v2089_v19 = vpop.eup %2088  ;;  %v1405_v61 = vadd.f32 1.0, %v2087_v32  ;;  %v1477_v63 = vsel %vm1476_vm6, %v1475_v27, %v1470_v58  ;;  %v1537_v49 = vsub.s32 %v1534_v33, %v2545_v25 }
 0x1ec   : > { %2106 = vrcp.f32 %v1404_v6  ;;  %v1402_v62 = vadd.f32 1.0, %v2089_v19  ;;  %v1484_v15 = vsel %vm1483_vm7, %v1482_v3, %v1477_v63  ;;  %v1544_v6 = vsub.s32 %v1541_v42, %v2545_v25 }
 0x1ed   : > { %v2091_v45 = vpop.eup %2090  ;;  %2108 = vpow2.f32 %v1750_v59  ;;  %v1555_v18 = vadd.s32 4294967184, %v2540_v14  ;;  %v1551_v54 = vsub.s32 %v1548_v47, %v2545_v25  ;;  %v1562_v57 = vadd.s32 4294967176, %v2540_v14 }
 0x1ee   : > { %2110 = vrcp.f32 %v1405_v61  ;;  %v1403_v1 = vadd.f32 1.0, %v2091_v45  ;;  %v2093_v2 = vpop.eup %2092 }
 0x1ef   : > { %2112 = vrcp.f32 %v1402_v62  ;;  %v2095_v7 = vpop.eup %2094  ;;  %v1489_v9 = vrot.slane %v2093_v2, %v1488_v60  ;;  %v1558_v60 = vsub.s32 %v1555_v18, %v2545_v25  ;;  %v1565_v53 = vsub.s32 %v1562_v57, %v2545_v25 }
 0x1f0   : > { %2114 = vrcp.f32 %v1403_v1  ;;  %v2097_v10 = vpop.eup %2096  ;;  %v1496_v16 = vrot.slane %v2095_v7, %v1495_v41 }
 0x1f1   : > { %v1491_v20 = vsel %vm1490_vm8, %v1489_v9, %v1484_v15  ;;  %v1406_v22 = vadd.f32 1.0, %v2097_v10 }
 0x1f2   : > { %v2099_v17 = vpop.eup %2098  ;;  %v1498_v11 = vsel %vm1497_vm9, %v1496_v16, %v1491_v20 }
 0x1f3   : > { %v2101_v23 = vpop.eup %2100  ;;  %v1407_v28 = vadd.f32 1.0, %v2099_v17  ;;  %2116 = vrcp.f32 %v1406_v22 }
 0x1f4   : > { %v2103_v29 = vpop.eup %2102  ;;  %v1503_v34 = vrot.slane %v2101_v23, %v1502_v13 }
 0x1f5   : > { %v2105_v31 = vpop.eup %2104  ;;  %2118 = vrcp.f32 %v1407_v28  ;;  %v1510_v4 = vrot.slane %v2103_v29, %v1509_v30 }
 0x1f6   : > { %v2107_v12 = vpop.eup %2106  ;;  %v1408_v36 = vadd.f32 1.0, %v2105_v31  ;;  %v1505_v44 = vsel %vm1504_vm10, %v1503_v34, %v1498_v11 }
 0x1f7   : > { %v2109_v37 = vpop.eup %2108  ;;  %v1512_v50 = vsel %vm1511_vm11, %v1510_v4, %v1505_v44  ;;  %v1531_v51 = vrot.slane %v2107_v12, %v1530_v39 }
 0x1f8   : > { %v2111_v43 = vpop.eup %2110  ;;  %2120 = vrcp.f32 %v1408_v36  ;;  %v1409_v46 = vadd.f32 1.0, %v2109_v37 }
 0x1f9   : > { %v2113_v48 = vpop.eup %2112  ;;  %v1538_v55 = vrot.slane %v2111_v43, %v1537_v49 }
 0x1fa   : > { %v2115_v0 = vpop.eup %2114  ;;  %v1517_v5 = vrot.slane %v2113_v48, %v1516_v35  ;;  %2122 = vrcp.f32 %v1409_v46 }
 0x1fb   : > { %v1524_v38 = vrot.slane %v2115_v0, %v1523_v40 }
 0x1fc   : > { %v1519_v52 = vsel %vm1518_vm12, %v1517_v5, %v1512_v50 }
 0x1fd   : > { %v1526_v56 = vsel %vm1525_vm13, %v1524_v38, %v1519_v52  ;;  %v2117_v32 = vpop.eup %2116 }
 0x1fe   : > { %v1533_v58 = vsel %vm1532_vm14, %v1531_v51, %v1526_v56  ;;  %v1545_v27 = vrot.slane %v2117_v32, %v1544_v6 }
 0x1ff   : > { %v2119_v59 = vpop.eup %2118  ;;  %v1540_v19 = vsel %vm1539_vm15, %v1538_v55, %v1533_v58 }
 0x200   : > { %v1552_v61 = vrot.slane %v2119_v59, %v1551_v54  ;;  %v1547_v45 = vsel %vm1546_vm0, %v1545_v27, %v1540_v19 }
 0x202   : > { %v2121_v41 = vpop.eup %2120  ;;  %v1554_v62 = vsel %vm1553_vm1, %v1552_v61, %v1547_v45 }
 0x203   : > { %v1559_v63 = vrot.slane %v2121_v41, %v1558_v60 }
 0x204   : > { %v2123_v14 = vpop.eup %2122 }
 0x205   : > { %v1561_v1 = vsel %vm1560_vm2, %v1559_v63, %v1554_v62  ;;  %v1566_v2 = vrot.slane %v2123_v14, %v1565_v53 }
 0x207   : > { %v1568_v25 = vsel %vm1567_vm3, %v1566_v2, %v1561_v1 }
 0x208   : > { %1570 = vst [vmem:[%s314_s5] sm:$0x1] %v1568_v25 }
 0x209   : > { %2137 = shalt.err (!%p2134_p5)
}
 0x20a   : > { %s2138_s17 = scalar_lea.hbm %s2589_s12, 16  ;;  %s2142_s20 = scalar_lea.hbm %s2642_s6, 32 }
 0x20b   : > { %p2139_p6 = scmp.ne.s32.totalorder %s2589_s12, %s2138_s17  ;;  %p2143_p10 = scmp.lt.u32.totalorder %s2589_s12, %s2642_s6 }
 0x20c   : > { %p2144_p11 = scmp.lt.u32.totalorder %s2142_s20, %s2138_s17  ;;  %p2146_p13 = scmp.lt.u32.totalorder %s2138_s17, %s2589_s12 }
 0x20d   : > { %p2140_p7 = pnand %p2139_p6, %p2283_p4 }
 0x20e   : > { %p2145_p12 = por %p2144_p11, %p2143_p10 }
 0x20f   : > { %p2141_p9 = pneg %p2140_p7 }
 0x210   : > { %p2147_p0 = por %p2146_p13, %p2145_p12 }
 0x212   : > { %p2148_p1 = pnand %p2147_p0, %p2141_p9 }
 0x214   : > { %2151 = shalt.err (!%p2148_p1)
}
 0x215   : > { %1959 = dma.vmem_to_hbm [thread:$0]  (%p2283_p4), %s2591_s29, 16, %s2589_s12, %s1572_s13  }
 0x216 PF: > { %p1966_p2 = scmp.ge.s32.totalorder %s2202_s28, 2  ;;  %s1597_s5 = sand.u32 1, %s2182_s23  }
 0x217   : > { %s1598_s7 = scalar_lea.sflag [#allocation4], %s1597_s5 }
 0x218   : > { %p1962_p3 = pnand %p1966_p2, %p2290_p8 }
 0x21a   : > { %2177 = dma.done.wait (!%p1962_p3), %s1598_s7, 16  }
 0x21b   : > { %2179 = vsyncadd (!%p1962_p3), %s1598_s7, 4294967280  ;;  %s20_s28 = sadd.s32 1, %s2202_s28   ;;  %s2645_s23 = smov %s2186_s24 }
 0x21c   : > { %p17_p5 = scmp.ge.s32.totalorder %s20_s28, 4   ;;  %s2646_s24 = smov %s2190_s25 }
 0x21d   : > { %s2647_s25 = smov %s2296_s11  ;;  %s2648_s26 = smov %s2198_s27 }
 0x21e   : > { %s2649_s27 = smov %s2651_s30  ;;  %19 = sbr.rel (!%p17_p5) target bundleno = 6 (0x6), region = 82 }
 0x225   :  { %1602 = vsyncpa [#allocation4], 1 }
 0x226   :  { %1604 = vsyncpa [#allocation4 + $0x1], 1 }

</bundles_post_ra>
